<compile_context>
chip_gen: v6e
topology: v6e:2x2x1
jax: 0.10.0
libtpu: 0.0.40
codegen_flags: <defaults>
</compile_context>

<pallas_src>
import jax
import jax.numpy as jnp
from jax.experimental import pallas as pl
from jax.experimental.pallas import tpu as pltpu


# ----------------------------- Pallas kernel -------------------------------

def _attentive_interp_kernel(off_ref, nxyz_ref, fnb_ref,
                             woff_ref, wnb_ref, wdist_ref, b1_ref,
                             wfc_n_ref, wfc_x_ref,
                             wm_n_ref, wm_x_ref, bm_ref,
                             out_ref):
    # off_ref:  (1, TM, 3)     off-surface (query) coordinates
    # nxyz_ref: (1, TM, K, 3)  gathered neighbour coordinates
    # fnb_ref:  (1, TM, K, d)  gathered neighbour features
    off = off_ref[0]
    nxyz = nxyz_ref[0]
    fnb = fnb_ref[0]
    TM, K, d = fnb.shape

    # --- relative position encoding: only the non-linear dist term is explicit,
    #     the linear terms are folded into the split matmuls below ---
    rel = off[:, None, :] - nxyz                                   # (TM, K, 3)
    dist = jnp.sqrt(jnp.sum(rel * rel, axis=-1, keepdims=True))    # (TM, K, 1)

    # --- mlp1 (1x1 conv, BN folded) + ReLU, concat-free; BN shift folded into
    #     the per-point term so it is added once per point, not per neighbour ---
    off_c = (jnp.dot(off, woff_ref[...], preferred_element_type=jnp.float32)
             + b1_ref[...])                                        # (TM, d)
    nb_c = jnp.dot(nxyz.reshape(TM * K, 3), wnb_ref[...],
                   preferred_element_type=jnp.float32).reshape(TM, K, d)
    fxyz = jnp.maximum(off_c[:, None, :] + nb_c + dist * wdist_ref[...],
                       0.0)                                        # (TM, K, d)

    # --- Att_pooling: both halves of the logits in one MXU pass;
    #     f_concat never materializes on the contraction side ---
    fnb2 = fnb.reshape(TM * K, d)
    fxyz2 = fxyz.reshape(TM * K, d)
    att = (jnp.dot(fnb2, wfc_n_ref[...], preferred_element_type=jnp.float32)
           + jnp.dot(fxyz2, wfc_x_ref[...], preferred_element_type=jnp.float32)
           ).reshape(TM, K, 2 * d)

    # softmax over the neighbour axis (channel-wise, so the two halves share
    # one max / exp / sum / reciprocal pass)
    att = att - jnp.max(att, axis=1, keepdims=True)
    e = jnp.exp(att)
    att = e * pl.reciprocal(jnp.sum(e, axis=1, keepdims=True), approx=True)

    agg_n = jnp.sum(fnb * att[:, :, :d], axis=1)                   # (TM, d)
    agg_x = jnp.sum(fxyz * att[:, :, d:], axis=1)                  # (TM, d)

    # --- final mlp (BN scale folded, shift added) + ReLU ---
    out = (jnp.dot(agg_n, wm_n_ref[...], preferred_element_type=jnp.float32)
           + jnp.dot(agg_x, wm_x_ref[...], preferred_element_type=jnp.float32)
           + bm_ref[...])
    out_ref[0] = jnp.maximum(out, 0.0)                             # (TM, d)


# ----------------------------- JAX glue ------------------------------------

def gather_neighbour(pc, neigh_idx):
    """pc: [B, N, d], neigh_idx: [B, M, K] int -> [B, M, K, d] (Ops.gather_neighbour)."""
    B, M, K = neigh_idx.shape
    d = pc.shape[-1]
    idx = neigh_idx.reshape(B, M * K)
    feats = jnp.take_along_axis(pc, idx[..., None], axis=1)        # [B, M*K, d]
    return feats.reshape(B, M, K, d)


def init_params(key, d_out):
    """Eval-mode parameters. Conv weights stored as [c_in, c_out] (transpose of
    PyTorch's [c_out, c_in, 1, 1]); BatchNorm folded to per-channel scale/shift."""
    d2 = 2 * d_out
    keys = jax.random.split(key, 5)

    def conv_w(k, cin, cout):
        return jax.random.normal(k, (cin, cout), jnp.float32) / jnp.sqrt(float(cin))

    def bn(k, c, eps=1e-5):
        kg, kb, km, kv = jax.random.split(k, 4)
        gamma = 1.0 + 0.1 * jax.random.normal(kg, (c,), jnp.float32)
        beta = 0.1 * jax.random.normal(kb, (c,), jnp.float32)
        mean = 0.1 * jax.random.normal(km, (c,), jnp.float32)
        var = jnp.abs(jax.random.normal(kv, (c,), jnp.float32)) + 0.5
        scale = gamma / jnp.sqrt(var + eps)
        shift = beta - mean * scale
        return scale.reshape(1, c), shift.reshape(1, c)

    p = {}
    p['w1'] = conv_w(keys[0], 10, d_out)       # mlp1: Conv2d(10, d_out, bn=True)
    p['s1'], p['b1'] = bn(keys[1], d_out)
    p['wfc'] = conv_w(keys[2], d2, d2)         # att fc: Conv2d(2*d_out, 2*d_out, bias=False)
    p['wm'] = conv_w(keys[3], d2, d_out)       # att mlp: Conv2d(2*d_out, d_out, bn=True)
    p['sm'], p['bm'] = bn(keys[4], d_out)
    return p


def prepare_params(raw):
    """Fold BN scales into weights and split matrices so the kernel never concatenates."""
    d = raw['w1'].shape[1]
    w1s = raw['w1'] * raw['s1']                # (10, d), BN scale folded in
    return {
        'w_off': w1s[1:4] + w1s[4:7],          # multiplies off_xyz_tile
        'w_nb': w1s[7:10] - w1s[1:4],          # multiplies neighbor_xyz
        'w_dist': w1s[0:1],                    # multiplies relative_dis
        'b1': raw['b1'],
        'wfc_n': raw['wfc'][:d, :],            # f_neighbours rows of fc weight
        'wfc_x': raw['wfc'][d:, :],            # f_xyz rows of fc weight
        'wm_n': raw['wm'][:d] * raw['sm'],
        'wm_x': raw['wm'][d:] * raw['sm'],
        'bm': raw['bm'],
    }


def _choose_tile_m(M, K, d, tile_m):
    if tile_m is None:
        # Per-point VMEM footprint (bytes): double-buffered input slabs plus the
        # main (TM,K,*) intermediates (fxyz, logits, exp, weighted products).
        per_point = 4 * (K * (8 * d + 12) + 4 * d + 6)
        tile_m = max(8, min(1024, (12 * 1024 * 1024) // max(per_point, 1)))
    tile = min(tile_m, max(M, 8))
    return -(-tile // 8) * 8                   # round up to a sublane multiple


def attentive_interpolation_forward(on_xyz, off_xyz, feature, neigh_idx, raw_params,
                                    *, tile_m=None):
    """on_xyz: [B,N,3]; off_xyz: [B,M,3]; feature: [B,d_out,N,1] (NCHW);
    neigh_idx: [B,M,K] int32.  Returns [B,d_out,M,1] (NCHW), matching
    attentive_interpolation.forward (task='rec', distance=True)."""
    B, M, K = neigh_idx.shape
    d = feature.shape[1]
    p = prepare_params(raw_params)

    feat_nlc = jnp.transpose(feature[..., 0], (0, 2, 1))           # [B, N, d]
    nxyz = gather_neighbour(on_xyz, neigh_idx)                     # [B, M, K, 3]
    fnb = gather_neighbour(feat_nlc, neigh_idx)                    # [B, M, K, d]

    # Tile over the query-point axis; pad to a whole number of tiles if needed.
    TILE_M = _choose_tile_m(M, K, d, tile_m)
    m_tiles = (M + TILE_M - 1) // TILE_M
    M_pad = m_tiles * TILE_M
    if M_pad != M:
        pad = M_pad - M
        off_xyz = jnp.pad(off_xyz, ((0, 0), (0, pad), (0, 0)))
        nxyz = jnp.pad(nxyz, ((0, 0), (0, pad), (0, 0), (0, 0)))
        fnb = jnp.pad(fnb, ((0, 0), (0, pad), (0, 0), (0, 0)))

    def rep(arr):  # replicated (grid-invariant) weight block — fetched once
        nd = arr.ndim
        return pl.BlockSpec(arr.shape, lambda b, m, _nd=nd: (0,) * _nd)

    weight_names = ['w_off', 'w_nb', 'w_dist', 'b1',
                    'wfc_n', 'wfc_x', 'wm_n', 'wm_x', 'bm']
    weights = [p[k] for k in weight_names]

    out = pl.pallas_call(
        _attentive_interp_kernel,
        out_shape=jax.ShapeDtypeStruct((B, M_pad, d), jnp.float32),
        grid=(B, m_tiles),
        in_specs=[pl.BlockSpec((1, TILE_M, 3), lambda b, m: (b, m, 0)),
                  pl.BlockSpec((1, TILE_M, K, 3), lambda b, m: (b, m, 0, 0)),
                  pl.BlockSpec((1, TILE_M, K, d), lambda b, m: (b, m, 0, 0))]
                 + [rep(w) for w in weights],
        out_specs=pl.BlockSpec((1, TILE_M, d), lambda b, m: (b, m, 0)),
        compiler_params=pltpu.CompilerParams(
            dimension_semantics=("parallel", "parallel"),
            vmem_limit_bytes=48 * 1024 * 1024),
    )(off_xyz, nxyz, fnb, *weights)

    out = out[:, :M]                                               # drop padding
    return jnp.transpose(out, (0, 2, 1))[..., None]                # [B, d_out, M, 1]


# ----------------------------- pure-JAX reference ---------------------------

def reference_forward(on_xyz, off_xyz, feature, neigh_idx, raw):
    """Direct (concat-based) translation of the PyTorch forward, eval-mode BN."""
    B, M, K = neigh_idx.shape
    feat_nlc = jnp.transpose(feature[..., 0], (0, 2, 1))
    nxyz = gather_neighbour(on_xyz, neigh_idx)
    fnb = gather_neighbour(feat_nlc, neigh_idx)
    off_tile = jnp.broadcast_to(off_xyz[:, :, None, :], nxyz.shape)
    rel = off_tile - nxyz
    dist = jnp.sqrt(jnp.sum(rel * rel, axis=-1, keepdims=True))
    relf = jnp.concatenate([dist, rel, off_tile, nxyz], axis=-1)     # [B,M,K,10]
    fxyz = jnp.maximum(relf @ raw['w1'] * raw['s1'] + raw['b1'], 0.0)
    fcat = jnp.concatenate([fnb, fxyz], axis=-1)                     # [B,M,K,2d]
    att = jax.nn.softmax(fcat @ raw['wfc'], axis=2)                  # softmax over K
    agg = jnp.sum(fcat * att, axis=2)                                # [B,M,2d]
    out = jnp.maximum(agg @ raw['wm'] * raw['sm'] + raw['bm'], 0.0)  # [B,M,d]
    return jnp.transpose(out, (0, 2, 1))[..., None]                  # [B,d,M,1]


# ----------------------------- main -----------------------------------------

if __name__ == "__main__":
    B, N, M, K, d_out = 2, 16, 8, 8, 32

    key = jax.random.PRNGKey(0)
    k_on, k_off, k_feat, k_idx, k_par = jax.random.split(key, 5)
    on_xyz = jax.random.normal(k_on, (B, N, 3), jnp.float32)
    off_xyz = jax.random.normal(k_off, (B, M, 3), jnp.float32)
    feature = jax.random.normal(k_feat, (B, d_out, N, 1), jnp.float32)   # NCHW
    neigh_idx = jax.random.randint(k_idx, (B, M, K), 0, N, jnp.int32)
    raw = init_params(k_par, d_out)

    fwd = jax.jit(attentive_interpolation_forward)
    out = jax.block_until_ready(fwd(on_xyz, off_xyz, feature, neigh_idx, raw))
    assert out.shape == (B, d_out, M, 1) and out.dtype == jnp.float32

    ref = reference_forward(on_xyz, off_xyz, feature, neigh_idx, raw)
    assert jnp.allclose(out, ref, rtol=2e-2, atol=2e-2), \
        float(jnp.max(jnp.abs(out - ref)))

    print("KERNEL_OK")
</pallas_src>

<mosaic_0001>
module attributes {stable_mosaic.version = 11 : i64} {
  func.func @_attentive_interp_kernel(%arg0: i32, %arg1: i32, %arg2: memref<1x8x3xf32, #tpu.memory_space<vmem>>, %arg3: memref<1x8x8x3xf32, #tpu.memory_space<vmem>>, %arg4: memref<1x8x8x32xf32, #tpu.memory_space<vmem>>, %arg5: memref<3x32xf32, #tpu.memory_space<vmem>>, %arg6: memref<3x32xf32, #tpu.memory_space<vmem>>, %arg7: memref<1x32xf32, #tpu.memory_space<vmem>>, %arg8: memref<1x32xf32, #tpu.memory_space<vmem>>, %arg9: memref<32x64xf32, #tpu.memory_space<vmem>>, %arg10: memref<32x64xf32, #tpu.memory_space<vmem>>, %arg11: memref<32x32xf32, #tpu.memory_space<vmem>>, %arg12: memref<32x32xf32, #tpu.memory_space<vmem>>, %arg13: memref<1x32xf32, #tpu.memory_space<vmem>>, %arg14: memref<1x8x32xf32, #tpu.memory_space<vmem>>) attributes {dimension_semantics = [#tpu.dimension_semantics<parallel>, #tpu.dimension_semantics<parallel>], iteration_bounds = array<i64: 2, 1>, scalar_prefetch = 0 : i64, scratch_operands = 0 : i64, tpu.core_type = #tpu.core_type<tc>, window_params = [{transform_indices = @transform_0, window_bounds = array<i64: 1, 8, 3>}, {transform_indices = @transform_1, window_bounds = array<i64: 1, 8, 8, 3>}, {transform_indices = @transform_2, window_bounds = array<i64: 1, 8, 8, 32>}, {pipeline_mode = #tpu.pipeline_mode<synchronous>, transform_indices = @transform_3, window_bounds = array<i64: 3, 32>}, {pipeline_mode = #tpu.pipeline_mode<synchronous>, transform_indices = @transform_4, window_bounds = array<i64: 3, 32>}, {pipeline_mode = #tpu.pipeline_mode<synchronous>, transform_indices = @transform_5, window_bounds = array<i64: 1, 32>}, {pipeline_mode = #tpu.pipeline_mode<synchronous>, transform_indices = @transform_6, window_bounds = array<i64: 1, 32>}, {pipeline_mode = #tpu.pipeline_mode<synchronous>, transform_indices = @transform_7, window_bounds = array<i64: 32, 64>}, {pipeline_mode = #tpu.pipeline_mode<synchronous>, transform_indices = @transform_8, window_bounds = array<i64: 32, 64>}, {pipeline_mode = #tpu.pipeline_mode<synchronous>, transform_indices = @transform_9, window_bounds = array<i64: 32, 32>}, {pipeline_mode = #tpu.pipeline_mode<synchronous>, transform_indices = @transform_10, window_bounds = array<i64: 32, 32>}, {pipeline_mode = #tpu.pipeline_mode<synchronous>, transform_indices = @transform_11, window_bounds = array<i64: 1, 32>}, {transform_indices = @transform_12, window_bounds = array<i64: 1, 8, 32>}]} {
    %c0 = arith.constant 0 : index
    %c0_0 = arith.constant 0 : index
    %c0_1 = arith.constant 0 : index
    %0 = vector.load %arg2[%c0, %c0_0, %c0_1] : memref<1x8x3xf32, #tpu.memory_space<vmem>>, vector<1x8x3xf32>
    %1 = vector.shape_cast %0 : vector<1x8x3xf32> to vector<8x3xf32>
    %c0_2 = arith.constant 0 : index
    %c0_3 = arith.constant 0 : index
    %c0_4 = arith.constant 0 : index
    %c0_5 = arith.constant 0 : index
    %2 = vector.load %arg3[%c0_2, %c0_3, %c0_4, %c0_5] : memref<1x8x8x3xf32, #tpu.memory_space<vmem>>, vector<1x8x8x3xf32>
    %3 = vector.shape_cast %2 : vector<1x8x8x3xf32> to vector<8x8x3xf32>
    %c0_6 = arith.constant 0 : index
    %c0_7 = arith.constant 0 : index
    %c0_8 = arith.constant 0 : index
    %c0_9 = arith.constant 0 : index
    %4 = vector.load %arg4[%c0_6, %c0_7, %c0_8, %c0_9] : memref<1x8x8x32xf32, #tpu.memory_space<vmem>>, vector<1x8x8x32xf32>
    %5 = vector.shape_cast %4 : vector<1x8x8x32xf32> to vector<8x8x32xf32>
    %6 = vector.shape_cast %1 : vector<8x3xf32> to vector<8x1x3xf32>
    %7 = vector.broadcast %6 : vector<8x1x3xf32> to vector<8x8x3xf32>
    %8 = arith.subf %7, %3 : vector<8x8x3xf32>
    %9 = arith.mulf %8, %8 : vector<8x8x3xf32>
    %cst = arith.constant dense<0.000000e+00> : vector<8x8xf32>
    %10 = vector.multi_reduction <add>, %9, %cst [2] : vector<8x8x3xf32> to vector<8x8xf32>
    %11 = vector.shape_cast %10 : vector<8x8xf32> to vector<8x8x1xf32>
    %12 = math.sqrt %11 : vector<8x8x1xf32>
    %c0_10 = arith.constant 0 : index
    %c0_11 = arith.constant 0 : index
    %13 = vector.load %arg5[%c0_10, %c0_11] : memref<3x32xf32, #tpu.memory_space<vmem>>, vector<3x32xf32>
    %cst_12 = arith.constant dense<0.000000e+00> : vector<8x32xf32>
    %14 = tpu.matmul %1, %13, %cst_12 {dimension_numbers = #tpu.dot_dimension_numbers<[1], [0], [0], [1], [0, 0, 1, 1], [], []>} : vector<8x3xf32>, vector<3x32xf32>, vector<8x32xf32> -> vector<8x32xf32>
    %c0_13 = arith.constant 0 : index
    %c0_14 = arith.constant 0 : index
    %15 = vector.load %arg8[%c0_13, %c0_14] : memref<1x32xf32, #tpu.memory_space<vmem>>, vector<1x32xf32>
    %16 = vector.broadcast %15 : vector<1x32xf32> to vector<8x32xf32>
    %17 = arith.addf %14, %16 : vector<8x32xf32>
    %18 = vector.shape_cast %3 : vector<8x8x3xf32> to vector<64x3xf32>
    %c0_15 = arith.constant 0 : index
    %c0_16 = arith.constant 0 : index
    %19 = vector.load %arg6[%c0_15, %c0_16] : memref<3x32xf32, #tpu.memory_space<vmem>>, vector<3x32xf32>
    %cst_17 = arith.constant dense<0.000000e+00> : vector<64x32xf32>
    %20 = tpu.matmul %18, %19, %cst_17 {dimension_numbers = #tpu.dot_dimension_numbers<[1], [0], [0], [1], [0, 0, 1, 1], [], []>} : vector<64x3xf32>, vector<3x32xf32>, vector<64x32xf32> -> vector<64x32xf32>
    %21 = vector.shape_cast %20 : vector<64x32xf32> to vector<8x8x32xf32>
    %22 = vector.shape_cast %17 : vector<8x32xf32> to vector<8x1x32xf32>
    %23 = vector.broadcast %22 : vector<8x1x32xf32> to vector<8x8x32xf32>
    %24 = arith.addf %23, %21 : vector<8x8x32xf32>
    %c0_18 = arith.constant 0 : index
    %c0_19 = arith.constant 0 : index
    %25 = vector.load %arg7[%c0_18, %c0_19] : memref<1x32xf32, #tpu.memory_space<vmem>>, vector<1x32xf32>
    %26 = vector.shape_cast %25 : vector<1x32xf32> to vector<1x1x32xf32>
    %27 = vector.broadcast %12 : vector<8x8x1xf32> to vector<8x8x32xf32>
    %28 = vector.broadcast %26 : vector<1x1x32xf32> to vector<8x8x32xf32>
    %29 = arith.mulf %27, %28 : vector<8x8x32xf32>
    %30 = arith.addf %24, %29 : vector<8x8x32xf32>
    %cst_20 = arith.constant 0.000000e+00 : f32
    %31 = vector.broadcast %cst_20 : f32 to vector<8x8x32xf32>
    %32 = arith.maximumf %30, %31 : vector<8x8x32xf32>
    %33 = vector.shape_cast %5 : vector<8x8x32xf32> to vector<64x32xf32>
    %34 = vector.shape_cast %32 : vector<8x8x32xf32> to vector<64x32xf32>
    %c0_21 = arith.constant 0 : index
    %c0_22 = arith.constant 0 : index
    %35 = vector.load %arg9[%c0_21, %c0_22] : memref<32x64xf32, #tpu.memory_space<vmem>>, vector<32x64xf32>
    %cst_23 = arith.constant dense<0.000000e+00> : vector<64x64xf32>
    %36 = tpu.matmul %33, %35, %cst_23 {dimension_numbers = #tpu.dot_dimension_numbers<[1], [0], [0], [1], [0, 0, 1, 1], [], []>} : vector<64x32xf32>, vector<32x64xf32>, vector<64x64xf32> -> vector<64x64xf32>
    %c0_24 = arith.constant 0 : index
    %c0_25 = arith.constant 0 : index
    %37 = vector.load %arg10[%c0_24, %c0_25] : memref<32x64xf32, #tpu.memory_space<vmem>>, vector<32x64xf32>
    %cst_26 = arith.constant dense<0.000000e+00> : vector<64x64xf32>
    %38 = tpu.matmul %34, %37, %cst_26 {dimension_numbers = #tpu.dot_dimension_numbers<[1], [0], [0], [1], [0, 0, 1, 1], [], []>} : vector<64x32xf32>, vector<32x64xf32>, vector<64x64xf32> -> vector<64x64xf32>
    %39 = arith.addf %36, %38 : vector<64x64xf32>
    %40 = vector.shape_cast %39 : vector<64x64xf32> to vector<8x8x64xf32>
    %cst_27 = arith.constant dense<0xFF800000> : vector<8x64xf32>
    %41 = vector.multi_reduction <maximumf>, %40, %cst_27 [1] : vector<8x8x64xf32> to vector<8x64xf32>
    %42 = vector.shape_cast %41 : vector<8x64xf32> to vector<8x1x64xf32>
    %43 = vector.broadcast %42 : vector<8x1x64xf32> to vector<8x8x64xf32>
    %44 = arith.subf %40, %43 : vector<8x8x64xf32>
    %45 = math.exp %44 : vector<8x8x64xf32>
    %cst_28 = arith.constant dense<0.000000e+00> : vector<8x64xf32>
    %46 = vector.multi_reduction <add>, %45, %cst_28 [1] : vector<8x8x64xf32> to vector<8x64xf32>
    %47 = vector.shape_cast %46 : vector<8x64xf32> to vector<8x1x64xf32>
    %48 = tpu.reciprocal %47 {approx = true} : vector<8x1x64xf32> -> vector<8x1x64xf32>
    %49 = vector.broadcast %48 : vector<8x1x64xf32> to vector<8x8x64xf32>
    %50 = arith.mulf %45, %49 : vector<8x8x64xf32>
    %51 = vector.extract_strided_slice %50 {offsets = [0, 0, 0], sizes = [8, 8, 32], strides = [1, 1, 1]} : vector<8x8x64xf32> to vector<8x8x32xf32>
    %52 = arith.mulf %5, %51 : vector<8x8x32xf32>
    %cst_29 = arith.constant dense<0.000000e+00> : vector<8x32xf32>
    %53 = vector.multi_reduction <add>, %52, %cst_29 [1] : vector<8x8x32xf32> to vector<8x32xf32>
    %54 = vector.extract_strided_slice %50 {offsets = [0, 0, 32], sizes = [8, 8, 32], strides = [1, 1, 1]} : vector<8x8x64xf32> to vector<8x8x32xf32>
    %55 = arith.mulf %32, %54 : vector<8x8x32xf32>
    %cst_30 = arith.constant dense<0.000000e+00> : vector<8x32xf32>
    %56 = vector.multi_reduction <add>, %55, %cst_30 [1] : vector<8x8x32xf32> to vector<8x32xf32>
    %c0_31 = arith.constant 0 : index
    %c0_32 = arith.constant 0 : index
    %57 = vector.load %arg11[%c0_31, %c0_32] : memref<32x32xf32, #tpu.memory_space<vmem>>, vector<32x32xf32>
    %cst_33 = arith.constant dense<0.000000e+00> : vector<8x32xf32>
    %58 = tpu.matmul %53, %57, %cst_33 {dimension_numbers = #tpu.dot_dimension_numbers<[1], [0], [0], [1], [0, 0, 1, 1], [], []>} : vector<8x32xf32>, vector<32x32xf32>, vector<8x32xf32> -> vector<8x32xf32>
    %c0_34 = arith.constant 0 : index
    %c0_35 = arith.constant 0 : index
    %59 = vector.load %arg12[%c0_34, %c0_35] : memref<32x32xf32, #tpu.memory_space<vmem>>, vector<32x32xf32>
    %cst_36 = arith.constant dense<0.000000e+00> : vector<8x32xf32>
    %60 = tpu.matmul %56, %59, %cst_36 {dimension_numbers = #tpu.dot_dimension_numbers<[1], [0], [0], [1], [0, 0, 1, 1], [], []>} : vector<8x32xf32>, vector<32x32xf32>, vector<8x32xf32> -> vector<8x32xf32>
    %61 = arith.addf %58, %60 : vector<8x32xf32>
    %c0_37 = arith.constant 0 : index
    %c0_38 = arith.constant 0 : index
    %62 = vector.load %arg13[%c0_37, %c0_38] : memref<1x32xf32, #tpu.memory_space<vmem>>, vector<1x32xf32>
    %63 = vector.broadcast %62 : vector<1x32xf32> to vector<8x32xf32>
    %64 = arith.addf %61, %63 : vector<8x32xf32>
    %cst_39 = arith.constant 0.000000e+00 : f32
    %65 = vector.broadcast %cst_39 : f32 to vector<8x32xf32>
    %66 = arith.maximumf %64, %65 : vector<8x32xf32>
    %c0_40 = arith.constant 0 : index
    %c0_41 = arith.constant 0 : index
    %c0_42 = arith.constant 0 : index
    %67 = vector.load %arg14[%c0_40, %c0_41, %c0_42] : memref<1x8x32xf32, #tpu.memory_space<vmem>>, vector<1x8x32xf32>
    %68 = vector.shape_cast %67 : vector<1x8x32xf32> to vector<8x32xf32>
    %69 = vector.shape_cast %66 : vector<8x32xf32> to vector<1x8x32xf32>
    tpu.vector_store %arg14[%c0_40, %c0_41, %c0_42], %69 {strides = array<i32>} : memref<1x8x32xf32, #tpu.memory_space<vmem>>, vector<1x8x32xf32>,
    return
  }
  func.func @transform_0(%arg0: i32, %arg1: i32) -> (i32, i32, i32) {
    %c0_i32 = arith.constant 0 : i32
    %c0_i32_0 = arith.constant 0 : i32
    return %arg0, %arg1, %c0_i32 : i32, i32, i32
  }
  func.func @transform_1(%arg0: i32, %arg1: i32) -> (i32, i32, i32, i32) {
    %c0_i32 = arith.constant 0 : i32
    %c0_i32_0 = arith.constant 0 : i32
    %c0_i32_1 = arith.constant 0 : i32
    return %arg0, %arg1, %c0_i32, %c0_i32_0 : i32, i32, i32, i32
  }
  func.func @transform_2(%arg0: i32, %arg1: i32) -> (i32, i32, i32, i32) {
    %c0_i32 = arith.constant 0 : i32
    %c0_i32_0 = arith.constant 0 : i32
    %c0_i32_1 = arith.constant 0 : i32
    return %arg0, %arg1, %c0_i32, %c0_i32_0 : i32, i32, i32, i32
  }
  func.func @transform_3(%arg0: i32, %arg1: i32) -> (i32, i32) {
    %c0_i32 = arith.constant 0 : i32
    %c0_i32_0 = arith.constant 0 : i32
    %c0_i32_1 = arith.constant 0 : i32
    return %c0_i32, %c0_i32_0 : i32, i32
  }
  func.func @transform_4(%arg0: i32, %arg1: i32) -> (i32, i32) {
    %c0_i32 = arith.constant 0 : i32
    %c0_i32_0 = arith.constant 0 : i32
    %c0_i32_1 = arith.constant 0 : i32
    return %c0_i32, %c0_i32_0 : i32, i32
  }
  func.func @transform_5(%arg0: i32, %arg1: i32) -> (i32, i32) {
    %c0_i32 = arith.constant 0 : i32
    %c0_i32_0 = arith.constant 0 : i32
    %c0_i32_1 = arith.constant 0 : i32
    return %c0_i32, %c0_i32_0 : i32, i32
  }
  func.func @transform_6(%arg0: i32, %arg1: i32) -> (i32, i32) {
    %c0_i32 = arith.constant 0 : i32
    %c0_i32_0 = arith.constant 0 : i32
    %c0_i32_1 = arith.constant 0 : i32
    return %c0_i32, %c0_i32_0 : i32, i32
  }
  func.func @transform_7(%arg0: i32, %arg1: i32) -> (i32, i32) {
    %c0_i32 = arith.constant 0 : i32
    %c0_i32_0 = arith.constant 0 : i32
    %c0_i32_1 = arith.constant 0 : i32
    return %c0_i32, %c0_i32_0 : i32, i32
  }
  func.func @transform_8(%arg0: i32, %arg1: i32) -> (i32, i32) {
    %c0_i32 = arith.constant 0 : i32
    %c0_i32_0 = arith.constant 0 : i32
    %c0_i32_1 = arith.constant 0 : i32
    return %c0_i32, %c0_i32_0 : i32, i32
  }
  func.func @transform_9(%arg0: i32, %arg1: i32) -> (i32, i32) {
    %c0_i32 = arith.constant 0 : i32
    %c0_i32_0 = arith.constant 0 : i32
    %c0_i32_1 = arith.constant 0 : i32
    return %c0_i32, %c0_i32_0 : i32, i32
  }
  func.func @transform_10(%arg0: i32, %arg1: i32) -> (i32, i32) {
    %c0_i32 = arith.constant 0 : i32
    %c0_i32_0 = arith.constant 0 : i32
    %c0_i32_1 = arith.constant 0 : i32
    return %c0_i32, %c0_i32_0 : i32, i32
  }
  func.func @transform_11(%arg0: i32, %arg1: i32) -> (i32, i32) {
    %c0_i32 = arith.constant 0 : i32
    %c0_i32_0 = arith.constant 0 : i32
    %c0_i32_1 = arith.constant 0 : i32
    return %c0_i32, %c0_i32_0 : i32, i32
  }
  func.func @transform_12(%arg0: i32, %arg1: i32) -> (i32, i32, i32) {
    %c0_i32 = arith.constant 0 : i32
    %c0_i32_0 = arith.constant 0 : i32
    return %arg0, %arg1, %c0_i32 : i32, i32, i32
  }
}

</mosaic_0001>

<bundles_post_ra>
// kernel: attentive_interpolation_forward.1
= control target key start
LH: loop header
LB: loop body
LE: loop exit
PB: predicated region body
PF: predicated region fallthrough
CT: control target
= control target key end

     0   :  { %s2936_s0 = inlined_call_operand.vmem [shape: f32[2,8,3], index: 0, kind: input, shape index: {}]   ;;  %s2937_s1 = inlined_call_operand.vmem [shape: f32[2,8,8,3], index: 1, kind: input, shape index: {}]   ;;  %s2938_s2 = inlined_call_operand.vmem [shape: f32[2,8,8,32], index: 2, kind: input, shape index: {}]   ;;  %s2939_s3 = inlined_call_operand.vmem [shape: f32[3,32], index: 3, kind: input, shape index: {}]   ;;  %s2940_s4 = inlined_call_operand.vmem [shape: f32[3,32], index: 4, kind: input, shape index: {}]   ;;  %s2941_s5 = inlined_call_operand.vmem [shape: f32[1,32], index: 5, kind: input, shape index: {}]   ;;  %s2942_s6 = inlined_call_operand.vmem [shape: f32[1,32], index: 6, kind: input, shape index: {}]   ;;  %s2943_s7 = inlined_call_operand.vmem [shape: f32[32,64], index: 7, kind: input, shape index: {}]   ;;  %s2944_s8 = inlined_call_operand.vmem [shape: f32[32,64], index: 8, kind: input, shape index: {}]   ;;  %s2945_s9 = inlined_call_operand.vmem [shape: f32[32,32], index: 9, kind: input, shape index: {}]   ;;  %s2946_s10 = inlined_call_operand.vmem [shape: f32[32,32], index: 10, kind: input, shape index: {}]   ;;  %s2947_s11 = inlined_call_operand.vmem [shape: f32[1,32], index: 11, kind: input, shape index: {}]   ;;  %s2948_s12 = inlined_call_operand.hbm [shape: f32[2,8,32], index: 12, kind: output, shape index: {}]  }
   0x1   :  { %2950 = sst [smem:[#allocation5_spill]] %s2936_s0 }
   0x2   :  { %2951 = sst [smem:[#allocation6_spill]] %s2937_s1 }
   0x3   :  { %2952 = sst [smem:[#allocation7_spill]] %s2938_s2 }
   0x4   :  { %2953 = sst [smem:[#allocation8_spill]] %s2939_s3 }
   0x5   :  { %17 = vsyncpa [#allocation3], 0 }
   0x6   :  { %19 = vsyncpa [#allocation3 + $0x1], 0  ;;  %s2388_s21 = smov 0   ;;  %s2390_s22 = smov 0  }
   0x7   :  { %s2392_s23 = smov 0   ;;  %s2394_s24 = smov 0  }
   0x8   :  { %s2396_s25 = smov 0   ;;  %s2398_s26 = smov 0  }
   0x9 LB: > { %s1957_s27 = sadd.s32 4294967295, %s2316_s26   ;;  %s1958_s28 = sadd.s32 4294967294, %s2316_s26   ;;  %s2316_s26 = sphi %s2398_s26, %s25_s26   ;;  %s2312_s25 = sphi %s2396_s25, %s2965_s25   ;;  %s2308_s24 = sphi %s2394_s24, %s2964_s24   ;;  %s2304_s23 = sphi %s2392_s23, %s2963_s23   ;;  %s2300_s22 = sphi %s2390_s22, %s2962_s22   ;;  %s2296_s21 = sphi %s2388_s21, %s2961_s21  }
   0xa   : > { %s37_s29 = sadd.s32 1, %s2312_s25  ;;  %s319_s30 = sadd.s32 1, %s2304_s23 }
   0xb   : > { %p39_p0 = scmp.ge.s32.totalorder %s37_s29, 2  ;;  %p329_p1 = scmp.ne.s32.totalorder %s2304_s23, %s2300_s22 }
   0xc   : > { %p330_p2 = scmp.eq.s32.totalorder %s1957_s27, 1  ;;  %p335_p3 = scmp.ne.s32.totalorder %s2300_s22, %s2296_s21 }
   0xd   : > { %s2967_s29 = smov (%p39_p0, %s37_s29), 0  ;;  %p336_p5 = scmp.eq.s32.totalorder %s1958_s28, 1 }
   0xe   : > { %p2428_p4 = por %p330_p2, %p329_p1  ;;  %s314_s14 = ssub.s32 %s2312_s25, %s2967_s29 }
   0xf   : > { %p1961_p6 = scmp.ge.s32.totalorder %s2316_s26, 1  ;;  %p317_p7 = scmp.eq.s32.totalorder %s314_s14, 0 }
  0x10   : > { %p2435_p8 = por %p336_p5, %p335_p3  ;;  %p417_p9 = scmp.lt.s32.totalorder %s2316_s26, 3 }
  0x11   : > { %s2441_s16 = scalar_select %p317_p7, %s2304_s23, %s319_s30  }
  0x12   : > { %p418_p10 = pnand %p1961_p6, %p417_p9 }
  0x13   : > { %s2956_s3 = sld [smem:[#allocation8_spill]] (!%p418_p10)  ;;  %p479_p11 = scmp.lt.s32.totalorder (!%p418_p10), %s2308_s24, 1 }
  0x14   : > { %421 = sbr.rel (%p418_p10) target bundleno = 862 (0x35e), region = 68  ;;  %s2957_s0 = sld [smem:[#allocation5_spill]] (!%p418_p10) }
  0x15   : > { %s2958_s1 = sld [smem:[#allocation6_spill]] (!%p418_p10)  ;;  %s2321_s17 = smov (!%p418_p10), 96  }
  0x16   : > { %s2960_s2 = sld [smem:[#allocation7_spill]] (!%p418_p10)  ;;  %s476_s20 = sand.u32 (!%p418_p10), 1, %s2300_s22  }
  0x17   : > { %s2001_s14 = sshll.u32 (!%p418_p10), %s2308_s24, 7 }
  0x18   : > { %s1848_s19 = scalar_lea.hbm (!%p418_p10), %s2948_s12, %s2001_s14 }
  0x19   : > { %v710_v0 = vld [vmem:[%s2956_s3] sm:$0x7]  ;;  %vm720_vm0 = vcmask 1042432   ;;  %v528_v1 = vlaneseq  ;;  %v2318_v2 = vmov 0.0   ;;  %vm2319_vm1 = vmmov 0   ;;  %s2454_s27 = scalar_select %p479_p11, %s2308_s24, 1 }
  0x1a   : > { %2051 = vmatprep.subr.mxu0 %v2318_v2  ;;  %2053 = vmatprep.mubr.msk.f32.mxu0 %vm2319_vm1, %v2318_v2  ;;  %v794_v3 = vld [vmem:[%s2940_s4] sm:$0x7]  ;;  %v2320_v4 = vmov 1966171168   ;;  %vm629_vm2 = vcmask 23552   ;;  %vm1064_vm3 = vcmask 261120  }
  0x1b   : > { %2052 = vmatpush3.msk.msra.mxu0 %vm720_vm0, %v710_v0  ;;  %2056 = vmatprep.subr.msk.mxu1 %vm720_vm0, %v794_v3  ;;  %v526_v5 = vunpack.c.l.s4 %v2320_v4  ;;  %v529_v6 = vshrl.u32 %v528_v1, 7  ;;  %s1963_s28 = sshll.u32 %s2454_s27, 3  ;;  %s2949_s30 = sshll.u32 %s2454_s27, 6  ;;  %v1059_v0 = vld [vmem:[%s2943_s7 + $0x18] sm:$0xff]  ;;  %v1058_v1 = vld [vmem:[%s2943_s7 + $0x10] sm:$0xff]  ;;  %v1057_v4 = vld [vmem:[%s2943_s7 + $0x8] sm:$0xff] }
  0x1c   : > { %2057 = vmatpush3.msk.msra.mxu1 %vm720_vm0, %v794_v3  ;;  %s485_s18 = scalar_lea.vmem %s2957_s0, %s1963_s28  ;;  %s2466_s3 = scalar_lea.vmem %s2958_s1, %s2949_s30  ;;  %v1063_v3 = vld [vmem:[%s2944_s8 + $0x18] sm:$0xff] }
  0x1d   : > { %v527_v7 = vunpack.c.0.s8 %v526_v5  ;;  %v506_v8 = vld [vmem:[%s485_s18] sm:$0xff]  ;;  %v508_v11 = vld [vmem:[%s2466_s3 + $0x8] sm:$0xff]  ;;  %v509_v13 = vld [vmem:[%s2466_s3 + $0x10] sm:$0xff]  ;;  %v2476_v15 = vsub.s32 0, %v529_v6  ;;  %2090 = vmatprep.subr.mxu1 %v1059_v0  ;;  %2070 = vmatprep.subr.mxu0 %v1063_v3  ;;  %s2959_s0 = sshll.u32 %s2454_s27, 6 }
  0x1e   : > { %v507_v10 = vld [vmem:[%s2466_s3] sm:$0xff]  ;;  %v524_v12 = vcombine.high %v506_v8, %v506_v8  ;;  %2054 = vmatmul.mubr.msk.f32.vlgmr.msra.gmra.mxu0 %vm629_vm2, %v506_v8  ;;  %v510_v17 = vld [vmem:[%s2466_s3 + $0x18] sm:$0xff]  ;;  %v512_v26 = vld [vmem:[%s2466_s3 + $0x28] sm:$0xff]  ;;  %s2528_s1 = scalar_lea.vmem %s2960_s2, %s2959_s0  ;;  %s1836_s0 = scalar_lea.sflag [#allocation3], %s476_s20 }
  0x1f   : > { %v2468_v9 = vsub.s32 %v527_v7, %v529_v6  ;;  %2058 = vmatprep.mubr.msk.f32.mxu1 %vm629_vm2, %v507_v10  ;;  %v511_v20 = vld [vmem:[%s2466_s3 + $0x20] sm:$0xff]  ;;  %v513_v31 = vld [vmem:[%s2466_s3 + $0x30] sm:$0xff]  ;;  %v514_v43 = vld [vmem:[%s2466_s3 + $0x38] sm:$0xff]  ;;  %2071 = vmatpush3.msra.mxu0 %v1063_v3  ;;  %s2322_s3 = smov [#allocation2]  }
  0x20   : > { %2059 = vmatmul.mubr.msk.f32.vlgmr.msra.gmra.mxu1 %vm629_vm2, %v508_v11  ;;  %v1062_v5 = vld [vmem:[%s2944_s8 + $0x10] sm:$0xff]  ;;  %v1056_v6 = vld [vmem:[%s2943_s7] sm:$0xff]  ;;  %v1061_v7 = vld [vmem:[%s2944_s8 + $0x8] sm:$0xff]  ;;  %s2244_s28 = sshll.u32 %s2322_s3, 4  ;;  %s2245_s28 = int_to_ptr.vmem [resolvable:$false] %s2244_s28 }
  0x21   : > { %v531_v14 = vrot.slane %v506_v8, %v2468_v9  ;;  %v538_v16 = vrot.slane %v524_v12, %v2468_v9  ;;  %2061 = vmatprep.mubr.msk.f32.mxu1 %vm629_vm2, %v509_v13  ;;  %2091 = vmatpush3.msra.mxu1 %v1059_v0  ;;  %v2540_v8 = vld [vmem:[%s2528_s1] sm:$0xff]  ;;  %v2553_v12 = vld [vmem:[%s2528_s1 + $0x10] sm:$0xff]  ;;  %s2246_s24 = scalar_lea.vmem %s2245_s28, 256 }
  0x22   : > { %2092 = vmatprep.subr.mxu1 %v1058_v1  ;;  %2072 = vmatprep.subr.mxu0 %v1062_v5 }
  0x23   : > { %v539_v18 = vcombine.high %v531_v14, %v531_v14  ;;  %v547_v19 = vrot.slane %v531_v14, %v2468_v9  ;;  %v554_v21 = vrot.slane %v538_v16, %v2468_v9  ;;  %v540_v22 = vcombine.high %v538_v16, %v538_v16  ;;  %2093 = vmatpush3.msra.mxu1 %v1058_v1  ;;  %v2564_v14 = vld [vmem:[%s2528_s1 + $0x20] sm:$0xff]  ;;  %v2567_v16 = vld [vmem:[%s2528_s1 + $0x28] sm:$0xff] }
  0x24   : > { %2062 = vmatmul.mubr.msk.f32.gmra.mxu1 %vm629_vm2, %v510_v17  ;;  %2094 = vmatprep.subr.mxu1 %v1057_v4 }
  0x25   : > { %v576_v23 = vrot.slane %v547_v19, %v2476_v15  ;;  %v569_v24 = vcombine.high %v547_v19, %v547_v19  ;;  %v561_v25 = vrot.slane %v539_v18, %v2468_v9  ;;  %2064 = vmatprep.mubr.msk.f32.mxu1 %vm629_vm2, %v511_v20  ;;  %v592_v27 = vrot.slane %v554_v21, %v2476_v15  ;;  %v2577_v18 = vld [vmem:[%s2528_s1 + $0x38] sm:$0xff] }
  0x26   : > { %v568_v28 = vrot.slane %v540_v22, %v2468_v9  ;;  %v570_v29 = vcombine.high %v554_v21, %v554_v21  ;;  %2095 = vmatpush3.msra.mxu1 %v1057_v4  ;;  %2073 = vmatpush3.msra.mxu0 %v1062_v5 }
  0x27   : > { %v613_v30 = vsub.f32 %v576_v23, %v507_v10  ;;  %v584_v32 = vrot.slane %v569_v24, %v2476_v15  ;;  %v580_v33 = vrot.slane %v561_v25, %v2476_v15  ;;  %v571_v34 = vcombine.high %v561_v25, %v561_v25  ;;  %2096 = vmatprep.subr.mxu1 %v1056_v6  ;;  %v1060_v10 = vld [vmem:[%s2944_s8] sm:$0xff] }
  0x28   : > { %v617_v35 = vsub.f32 %v592_v27, %v511_v20  ;;  %v596_v36 = vrot.slane %v568_v28, %v2476_v15  ;;  %v600_v37 = vrot.slane %v570_v29, %v2476_v15  ;;  %v572_v38 = vcombine.high %v568_v28, %v568_v28  ;;  %2065 = vmatmul.mubr.msk.f32.gmra.mxu1 %vm629_vm2, %v512_v26 }
  0x29   : > { %v621_v39 = vmul.f32 %v613_v30, %v613_v30  ;;  %v615_v40 = vsub.f32 %v584_v32, %v509_v13  ;;  %v614_v41 = vsub.f32 %v580_v33, %v508_v11  ;;  %v588_v42 = vrot.slane %v571_v34, %v2476_v15  ;;  %2067 = vmatprep.mubr.msk.f32.mxu1 %vm629_vm2, %v513_v31  ;;  %v2546_v11 = vld [vmem:[%s2528_s1 + $0x8] sm:$0xff]  ;;  %v2559_v13 = vld [vmem:[%s2528_s1 + $0x18] sm:$0xff] }
  0x2a   : > { %v618_v44 = vsub.f32 %v596_v36, %v512_v26  ;;  %v604_v45 = vrot.slane %v572_v38, %v2476_v15  ;;  %v625_v50 = vmul.f32 %v617_v35, %v617_v35  ;;  %v619_v54 = vsub.f32 %v600_v37, %v513_v31  ;;  %2074 = vmatprep.subr.mxu0 %v1061_v7 }
  0x2b   : > { %v630_v46 = vsel %vm629_vm2, %v621_v39, 0.0  ;;  %v623_v47 = vmul.f32 %v615_v40, %v615_v40  ;;  %v622_v48 = vmul.f32 %v614_v41, %v614_v41  ;;  %v616_v49 = vsub.f32 %v588_v42, %v510_v17  ;;  %2097 = vmatpush3.msra.mxu1 %v1056_v6  ;;  %2075 = vmatpush3.msra.mxu0 %v1061_v7  ;;  %v2574_v17 = vld [vmem:[%s2528_s1 + $0x30] sm:$0xff]  ;;  %v1968_v39 = vld [vmem:[%s2942_s6] ss:$0 sm:$0xff]  ;;  %s1962_s1 = sshll.u32 %s476_s20, 3 }
  0x2c   : > { %631 = vadd.xlane.f32.xlu0 %v630_v46  ;;  %2068 = vmatmul.mubr.msk.f32.gmra.mxu1 %vm629_vm2, %v514_v43  ;;  %v626_v56 = vmul.f32 %v618_v44, %v618_v44  ;;  %v620_v57 = vsub.f32 %v604_v45, %v514_v43  ;;  %v642_v58 = vsel %vm629_vm2, %v625_v50, 0.0  ;;  %v627_v59 = vmul.f32 %v619_v54, %v619_v54 }
  0x2d   : > { %v636_v51 = vsel %vm629_vm2, %v623_v47, 0.0  ;;  %v633_v52 = vsel %vm629_vm2, %v622_v48, 0.0  ;;  %v624_v53 = vmul.f32 %v616_v49, %v616_v49  ;;  %2098 = vmatprep.mubr.msk.f32.mxu1 %vm1064_vm3, %v2540_v8  ;;  %2076 = vmatprep.subr.mxu0 %v1060_v10 }
  0x2e   : > { %637 = vadd.xlane.f32.xlu1 %v636_v51  ;;  %v645_v60 = vsel %vm629_vm2, %v626_v56, 0.0  ;;  %v628_v61 = vmul.f32 %v620_v57, %v620_v57  ;;  %v648_v62 = vsel %vm629_vm2, %v627_v59, 0.0  ;;  %2077 = vmatpush3.msra.mxu0 %v1060_v10  ;;  %v2622_v51 = vld [vmem:[%s2941_s5] ss:$0 sm:$0xff] }
  0x2f   : > { %v639_v55 = vsel %vm629_vm2, %v624_v53, 0.0  ;;  %2110 = vmatprep.subr.mxu0 %v2318_v2 }
  0x30   : > { %634 = vadd.xlane.f32.xlu0 %v633_v52  ;;  %v651_v63 = vsel %vm629_vm2, %v628_v61, 0.0  ;;  %2099 = vmatmul.mubr.msk.f32.vlgmr.msra.gmra.mxu1 %vm1064_vm3, %v2546_v11 }
  0x31   : > { %2101 = vmatprep.mubr.msk.f32.mxu1 %vm1064_vm3, %v2553_v12 }
  0x32   : > { %640 = vadd.xlane.f32.xlu1 %v639_v55 }
  0x34   : > { %643 = vadd.xlane.f32.xlu0 %v642_v58  ;;  %2102 = vmatmul.mubr.msk.f32.gmra.mxu1 %vm1064_vm3, %v2559_v13 }
  0x35   : > { %2104 = vmatprep.mubr.msk.f32.mxu1 %vm1064_vm3, %v2564_v14 }
  0x36   : > { %646 = vadd.xlane.f32.xlu1 %v645_v60 }
  0x38   : > { %649 = vadd.xlane.f32.xlu0 %v648_v62  ;;  %2105 = vmatmul.mubr.msk.f32.gmra.mxu1 %vm1064_vm3, %v2567_v16 }
  0x39   : > { %2107 = vmatprep.mubr.msk.f32.mxu1 %vm1064_vm3, %v2574_v17 }
  0x3a   : > { %652 = vadd.xlane.f32.xlu1 %v651_v63 }
  0x3c   : > { %2108 = vmatmul.mubr.msk.f32.gmra.mxu1 %vm1064_vm3, %v2577_v18 }
  0xb5   : > { %v632_v19 = vpop.xlane.xlu0 %631 }
  0xb6   : > { %2192 = vrsqrt.f32 %v632_v19  ;;  %vm656_vm4 = vcmp.eq.f32.partialorder %v632_v19, inf  ;;  %vm658_vm5 = vcmp.eq.f32.partialorder %v632_v19, 0.0  ;;  %v659_v34 = vand.u32 2147483648, %v632_v19 }
  0xb7   : > { %v638_v20 = vpop.xlane.xlu1 %637 }
  0xb8   : > { %2194 = vrsqrt.f32 %v638_v20  ;;  %vm670_vm6 = vcmp.eq.f32.partialorder %v638_v20, inf  ;;  %vm672_vm7 = vcmp.eq.f32.partialorder %v638_v20, 0.0  ;;  %v673_v37 = vand.u32 2147483648, %v638_v20 }
  0xb9   : > { %v2583_v21 = vpop.xlane.xlu0 %634 }
  0xba   : > { %2196 = vrsqrt.f32 %v2583_v21  ;;  %vm663_vm8 = vcmp.eq.f32.partialorder %v2583_v21, inf  ;;  %vm665_vm9 = vcmp.eq.f32.partialorder %v2583_v21, 0.0  ;;  %v666_v40 = vand.u32 2147483648, %v2583_v21 }
  0xbb   : > { %v2585_v22 = vpop.xlane.xlu1 %640 }
  0xbc   : > { %2198 = vrsqrt.f32 %v2585_v22  ;;  %vm677_vm10 = vcmp.eq.f32.partialorder %v2585_v22, inf  ;;  %vm679_vm11 = vcmp.eq.f32.partialorder %v2585_v22, 0.0  ;;  %v680_v42 = vand.u32 2147483648, %v2585_v22 }
  0xbd   : > { %v2588_v23 = vpop.xlane.xlu0 %643 }
  0xbe   : > { %2200 = vrsqrt.f32 %v2588_v23  ;;  %vm684_vm12 = vcmp.eq.f32.partialorder %v2588_v23, inf  ;;  %vm686_vm13 = vcmp.eq.f32.partialorder %v2588_v23, 0.0  ;;  %v687_v47 = vand.u32 2147483648, %v2588_v23 }
  0xbf   : > { %v2592_v24 = vpop.xlane.xlu1 %646 }
  0xc0   : > { %2202 = vrsqrt.f32 %v2592_v24  ;;  %vm691_vm14 = vcmp.eq.f32.partialorder %v2592_v24, inf  ;;  %vm693_vm15 = vcmp.eq.f32.partialorder %v2592_v24, 0.0  ;;  %v694_v53 = vand.u32 2147483648, %v2592_v24 }
  0xc1   : > { %v2594_v25 = vpop.xlane.xlu0 %649 }
  0xc2   : > { %2204 = vrsqrt.f32 %v2594_v25  ;;  %vm698_vm0 = vcmp.eq.f32.partialorder %v2594_v25, inf  ;;  %v701_v57 = vand.u32 2147483648, %v2594_v25  ;;  %vm700_vm2 = vcmp.eq.f32.partialorder %v2594_v25, 0.0 }
  0xc3   : > { %v2597_v26 = vpop.xlane.xlu1 %652  ;;  %v2193_v27 = vpop.eup %2192 }
  0xc4   : > { %2206 = vrsqrt.f32 %v2597_v26  ;;  %v655_v31 = vmul.f32 %v2193_v27, %v632_v19  ;;  %v708_v3 = vand.u32 2147483648, %v2597_v26 }
  0xc5   : > { %v2195_v28 = vpop.eup %2194 }
  0xc6   : > { %v669_v33 = vmul.f32 %v2195_v28, %v638_v20  ;;  %v657_v41 = vsel %vm656_vm4, %v632_v19, %v655_v31  ;;  %vm705_vm4 = vcmp.eq.f32.partialorder %v2597_v26, inf }
  0xc7   : > { %v2197_v29 = vpop.eup %2196  ;;  %v660_v52 = vsel %vm658_vm5, %v659_v34, %v657_v41  ;;  %vm707_vm5 = vcmp.eq.f32.partialorder %v2597_v26, 0.0 }
  0xc8   : > { %v662_v35 = vmul.f32 %v2197_v29, %v2583_v21  ;;  %v671_v43 = vsel %vm670_vm6, %v638_v20, %v669_v33  ;;  %v1032_v1 = vmul.f32 %v2622_v51, %v660_v52  ;;  %vm1323_vm6 = vcmask 523264  }
  0xc9   : > { %v2199_v30 = vpop.eup %2198  ;;  %v674_v55 = vsel %vm672_vm7, %v673_v37, %v671_v43  ;;  %vm1652_vm7 = vcmask 1041409  }
  0xca   : > { %v676_v36 = vmul.f32 %v2199_v30, %v2585_v22  ;;  %v664_v45 = vsel %vm663_vm8, %v2583_v21, %v662_v35  ;;  %v1034_v27 = vmul.f32 %v2622_v51, %v674_v55  ;;  %vm1654_vm8 = vcmask 1042434  }
  0xcb   : > { %v2201_v32 = vpop.eup %2200  ;;  %v667_v61 = vsel %vm665_vm9, %v666_v40, %v664_v45  ;;  %vm1656_vm9 = vcmask 1043459  }
  0xcc   : > { %v683_v38 = vmul.f32 %v2201_v32, %v2588_v23  ;;  %v678_v46 = vsel %vm677_vm10, %v2585_v22, %v676_v36  ;;  %v1033_v21 = vmul.f32 %v2622_v51, %v667_v61  ;;  %vm1658_vm10 = vcmask 1044484  }
  0xcd   : > { %v2203_v48 = vpop.eup %2202  ;;  %v681_v63 = vsel %vm679_vm11, %v680_v42, %v678_v46  ;;  %vm1660_vm11 = vcmask 1045509  }
  0xce   : > { %v685_v56 = vsel %vm684_vm12, %v2588_v23, %v683_v38  ;;  %v690_v0 = vmul.f32 %v2203_v48, %v2592_v24  ;;  %v1035_v22 = vmul.f32 %v2622_v51, %v681_v63  ;;  %vm1662_vm12 = vcmask 1046534  }
  0xcf   : > { %v2205_v58 = vpop.eup %2204  ;;  %v688_v19 = vsel %vm686_vm13, %v687_v47, %v685_v56  ;;  %vm1664_vm13 = vcmask 1047559  }
  0xd0   : > { %v697_v20 = vmul.f32 %v2205_v58, %v2594_v25  ;;  %v692_v33 = vsel %vm691_vm14, %v2592_v24, %v690_v0  ;;  %v1036_v35 = vmul.f32 %v2622_v51, %v688_v19 }
  0xd1   : > { %v2207_v4 = vpop.eup %2206  ;;  %v695_v52 = vsel %vm693_vm15, %v694_v53, %v692_v33 }
  0xd2   : > { %v704_v23 = vmul.f32 %v2207_v4, %v2597_v26  ;;  %v699_v43 = vsel %vm698_vm0, %v2594_v25, %v697_v20  ;;  %v1037_v25 = vmul.f32 %v2622_v51, %v695_v52 }
  0xd3   : > { %v702_v24 = vsel %vm700_vm2, %v701_v57, %v699_v43 }
  0xde   : > { %v790_v44 = vpop.f32.mrf.mxu0 }
  0xdf   : > { %v791_v49 = vadd.f32 %v1968_v39, %v790_v44 }
  0xe0   : > { %v2060_v50 = vpop.f32.mrf.mxu1  ;;  %v2055_v54 = vpop.f32.mrf.mxu0 }
  0xe1   : > { %v928_v59 = vcombine.high %v791_v49, %v791_v49  ;;  %v935_v60 = vrot.slane %v791_v49, %v2468_v9 }
  0xe2   : > { %v888_v62 = vpop.f32.mrf.mxu1 }
  0xe3   : > { %v942_v5 = vrot.slane %v928_v59, %v2468_v9  ;;  %v943_v6 = vcombine.high %v935_v60, %v935_v60  ;;  %v951_v7 = vrot.slane %v935_v60, %v2468_v9 }
  0xe4   : > { %v2063_v10 = vpop.f32.mrf.mxu1 }
  0xe5   : > { %v965_v28 = vrot.slane %v943_v6, %v2468_v9  ;;  %v980_v29 = vrot.slane %v951_v7, %v2476_v15  ;;  %v973_v31 = vcombine.high %v951_v7, %v951_v7  ;;  %v944_v32 = vcombine.high %v942_v5, %v942_v5 }
  0xe6   : > { %v898_v30 = vpop.f32.mrf.mxu1  ;;  %v958_v34 = vrot.slane %v942_v5, %v2468_v9 }
  0xe7   : > { %v984_v36 = vrot.slane %v965_v28, %v2476_v15  ;;  %v1017_v37 = vadd.f32 %v980_v29, %v888_v62  ;;  %v975_v38 = vcombine.high %v965_v28, %v965_v28  ;;  %v988_v39 = vrot.slane %v973_v31, %v2476_v15 }
  0xe8   : > { %v2066_v40 = vpop.f32.mrf.mxu1  ;;  %v972_v41 = vrot.slane %v944_v32, %v2468_v9  ;;  %v996_v42 = vrot.slane %v958_v34, %v2476_v15  ;;  %v974_v44 = vcombine.high %v958_v34, %v958_v34  ;;  %v706_v62 = vsel %vm705_vm4, %v2597_v26, %v704_v23 }
  0xe9   : > { %v1018_v45 = vadd.f32 %v2060_v50, %v984_v36  ;;  %v2667_v46 = vadd.f32 %v1032_v1, %v1017_v37  ;;  %v992_v47 = vrot.slane %v975_v38, %v2476_v15  ;;  %v1019_v48 = vadd.f32 %v988_v39, %v898_v30 }
  0xea   : > { %v908_v49 = vpop.f32.mrf.mxu1  ;;  %v1000_v54 = vrot.slane %v972_v41, %v2476_v15  ;;  %v976_v55 = vcombine.high %v972_v41, %v972_v41  ;;  %v1004_v53 = vrot.slane %v974_v44, %v2476_v15  ;;  %v709_v57 = vsel %vm707_vm5, %v708_v3, %v706_v62 }
  0xeb   : > { %v1021_v9 = vadd.f32 %v996_v42, %v908_v49  ;;  %v2673_v56 = vadd.f32 %v1033_v21, %v1018_v45  ;;  %v1048_v58 = vmax.f32 %v2667_v46, 0.0  ;;  %v1020_v59 = vadd.f32 %v2063_v10, %v992_v47 }
  0xec   : > { %v2676_v60 = vadd.f32 %v1034_v27, %v1019_v48  ;;  %v2069_v50 = vpop.f32.mrf.mxu1  ;;  %v1022_v61 = vadd.f32 %v2066_v40, %v1000_v54  ;;  %v1008_v4 = vrot.slane %v976_v55, %v2476_v15  ;;  %v1038_v10 = vmul.f32 %v2622_v51, %v702_v24 }
  0xed   : > { %v1049_v63 = vmax.f32 %v2673_v56, 0.0  ;;  %v2685_v0 = vadd.f32 %v1035_v22, %v1020_v59  ;;  %2078 = vmatprep.mubr.msk.f32.mxu0 %vm1064_vm3, %v1048_v58  ;;  %v2692_v6 = vadd.f32 %v1036_v35, %v1021_v9  ;;  %v1039_v27 = vmul.f32 %v2622_v51, %v709_v57 }
  0xee   : > { %v1050_v1 = vmax.f32 %v2676_v60, 0.0  ;;  %v918_v5 = vpop.f32.mrf.mxu1  ;;  %v2705_v19 = vadd.f32 %v1037_v25, %v1022_v61  ;;  %v1024_v20 = vadd.f32 %v2069_v50, %v1008_v4 }
  0xef   : > { %v1023_v7 = vadd.f32 %v1004_v53, %v918_v5  ;;  %2079 = vmatmul.mubr.msk.f32.vlgmr.msra.gmra.mxu0 %vm1064_vm3, %v1049_v63  ;;  %v1051_v15 = vmax.f32 %v2685_v0, 0.0  ;;  %v1052_v21 = vmax.f32 %v2692_v6, 0.0 }
  0xf0   : > { %2081 = vmatprep.mubr.msk.f32.mxu0 %vm1064_vm3, %v1050_v1  ;;  %v1053_v26 = vmax.f32 %v2705_v19, 0.0  ;;  %v2718_v3 = vadd.f32 %v1039_v27, %v1024_v20  ;;  %v2100_v29 = vpop.f32.mrf.mxu1 }
  0xf1   : > { %v2708_v22 = vadd.f32 %v1038_v10, %v1023_v7 }
  0xf2   : > { %v1055_v51 = vmax.f32 %v2718_v3, 0.0  ;;  %v1284_v30 = vpop.f32.mrf.mxu1 }
  0xf3   : > { %2082 = vmatmul.mubr.msk.f32.gmra.mxu0 %vm1064_vm3, %v1051_v15  ;;  %v1054_v28 = vmax.f32 %v2708_v22, 0.0 }
  0xf4   : > { %2084 = vmatprep.mubr.msk.f32.mxu0 %vm1064_vm3, %v1052_v21  ;;  %v2103_v31 = vpop.f32.mrf.mxu1 }
  0xf6   : > { %v1294_v32 = vpop.f32.mrf.mxu1 }
  0xf7   : > { %2085 = vmatmul.mubr.msk.f32.gmra.mxu0 %vm1064_vm3, %v1053_v26 }
  0xf8   : > { %2087 = vmatprep.mubr.msk.f32.mxu0 %vm1064_vm3, %v1054_v28  ;;  %v2106_v33 = vpop.f32.mrf.mxu1 }
  0xfa   : > { %v1304_v40 = vpop.f32.mrf.mxu1 }
  0xfb   : > { %2088 = vmatmul.mubr.msk.f32.gmra.mxu0 %vm1064_vm3, %v1055_v51 }
  0xfc   : > { %2118 = vmatprep.mubr.msk.f32.mxu0 %vm2319_vm1, %v2318_v2  ;;  %v2109_v55 = vpop.f32.mrf.mxu1 }
 0x1af   : > { %v2080_v23 = vpop.f32.mrf.mxu0 }
 0x1b0   : > { %v1290_v34 = vadd.f32 %v2100_v29, %v2080_v23  ;;  %v1314_v29 = vpop.f32.mrf.mxu1 }
 0x1b1   : > { %v1155_v35 = vpop.f32.mrf.mxu0 }
 0x1b2   : > { %v1331_v36 = vsel %vm1323_vm6, %v1290_v34, -inf  ;;  %v1285_v37 = vadd.f32 %v1284_v30, %v1155_v35 }
 0x1b3   : > { %v1332_v38 = vrot.slane %v1331_v36, 4  ;;  %v2083_v39 = vpop.f32.mrf.mxu0 }
 0x1b4   : > { %v1324_v41 = vsel %vm1323_vm6, %v1285_v37, -inf  ;;  %v2735_v42 = vadd.f32 %v2103_v31, %v2083_v39 }
 0x1b5   : > { %v1333_v43 = vmax.f32 %v1331_v36, %v1332_v38  ;;  %v1325_v44 = vrot.slane %v1324_v41, 4  ;;  %v1165_v45 = vpop.f32.mrf.mxu0 }
 0x1b6   : > { %v1345_v47 = vsel %vm1323_vm6, %v2735_v42, -inf  ;;  %v2739_v48 = vadd.f32 %v1294_v32, %v1165_v45 }
 0x1b7   : > { %v1334_v49 = vrot.slane %v1333_v43, 2  ;;  %v1326_v52 = vmax.f32 %v1324_v41, %v1325_v44  ;;  %v1346_v54 = vrot.slane %v1345_v47, 4  ;;  %v2086_v9 = vpop.f32.mrf.mxu0 }
 0x1b8   : > { %v1338_v59 = vsel %vm1323_vm6, %v2739_v48, -inf  ;;  %v2743_v50 = vadd.f32 %v2106_v33, %v2086_v9 }
 0x1b9   : > { %v1335_v61 = vmax.f32 %v1333_v43, %v1334_v49  ;;  %v1327_v62 = vrot.slane %v1326_v52, 2  ;;  %v1347_v24 = vmax.f32 %v1345_v47, %v1346_v54  ;;  %v1339_v53 = vrot.slane %v1338_v59, 4  ;;  %v1175_v4 = vpop.f32.mrf.mxu0 }
 0x1ba   : > { %v1359_v5 = vsel %vm1323_vm6, %v2743_v50, -inf  ;;  %v1305_v7 = vadd.f32 %v1304_v40, %v1175_v4 }
 0x1bb   : > { %v1336_v25 = vrot.slane %v1335_v61, 1  ;;  %v1328_v57 = vmax.f32 %v1326_v52, %v1327_v62  ;;  %v1348_v10 = vrot.slane %v1347_v24, 2  ;;  %v1340_v20 = vmax.f32 %v1338_v59, %v1339_v53  ;;  %v2089_v27 = vpop.f32.mrf.mxu0 }
 0x1bc   : > { %v1360_v30 = vrot.slane %v1359_v5, 4  ;;  %v1352_v31 = vsel %vm1323_vm6, %v1305_v7, -inf  ;;  %v1320_v32 = vadd.f32 %v2109_v55, %v2089_v27 }
 0x1bd   : > { %v1337_v23 = vmax.f32 %v1335_v61, %v1336_v25  ;;  %v1329_v33 = vrot.slane %v1328_v57, 1  ;;  %v1349_v35 = vmax.f32 %v1347_v24, %v1348_v10  ;;  %v1341_v36 = vrot.slane %v1340_v20, 2  ;;  %v1185_v38 = vpop.f32.mrf.mxu0 }
 0x1be   : > { %v1361_v39 = vmax.f32 %v1359_v5, %v1360_v30  ;;  %v1353_v41 = vrot.slane %v1352_v31, 4  ;;  %v1373_v43 = vsel %vm1323_vm6, %v1320_v32, -inf  ;;  %v1315_v40 = vadd.f32 %v1314_v29, %v1185_v38 }
 0x1bf   : > { %v1381_v44 = vsub.f32 %v1290_v34, %v1337_v23  ;;  %v1330_v45 = vmax.f32 %v1328_v57, %v1329_v33  ;;  %v1350_v47 = vrot.slane %v1349_v35, 1  ;;  %v1342_v49 = vmax.f32 %v1340_v20, %v1341_v36 }
 0x1c0   : > { %v1362_v52 = vrot.slane %v1361_v39, 2  ;;  %v1354_v54 = vmax.f32 %v1352_v31, %v1353_v41  ;;  %v1374_v9 = vrot.slane %v1373_v43, 4  ;;  %v1366_v59 = vsel %vm1323_vm6, %v1315_v40, -inf }
 0x1c1   : > { %v1390_v55 = vmul.f32 1.442695, %v1381_v44  ;;  %v1380_v61 = vsub.f32 %v1285_v37, %v1330_v45  ;;  %v1351_v62 = vmax.f32 %v1349_v35, %v1350_v47  ;;  %v1343_v24 = vrot.slane %v1342_v49, 1 }
 0x1c2   : > { %v1363_v53 = vmax.f32 %v1361_v39, %v1362_v52  ;;  %v1355_v4 = vrot.slane %v1354_v54, 2  ;;  %v1375_v5 = vmax.f32 %v1373_v43, %v1374_v9  ;;  %v1367_v25 = vrot.slane %v1366_v59, 4 }
 0x1c3   : > { %2208 = vpow2.f32 %v1390_v55  ;;  %v1388_v10 = vmul.f32 1.442695, %v1380_v61  ;;  %v1383_v34 = vsub.f32 %v2735_v42, %v1351_v62  ;;  %v1344_v57 = vmax.f32 %v1342_v49, %v1343_v24 }
 0x1c4   : > { %v1364_v27 = vrot.slane %v1363_v53, 1  ;;  %v1356_v20 = vmax.f32 %v1354_v54, %v1355_v4  ;;  %v1376_v29 = vrot.slane %v1375_v5, 2  ;;  %v1368_v30 = vmax.f32 %v1366_v59, %v1367_v25 }
 0x1c5   : > { %2210 = vpow2.f32 %v1388_v10  ;;  %v1394_v31 = vmul.f32 1.442695, %v1383_v34  ;;  %v1382_v23 = vsub.f32 %v2739_v48, %v1344_v57 }
 0x1c6   : > { %v1365_v37 = vmax.f32 %v1363_v53, %v1364_v27  ;;  %v1357_v33 = vrot.slane %v1356_v20, 1  ;;  %v1377_v35 = vmax.f32 %v1375_v5, %v1376_v29  ;;  %v1369_v36 = vrot.slane %v1368_v30, 2 }
 0x1c7   : > { %2212 = vpow2.f32 %v1394_v31  ;;  %v1392_v38 = vmul.f32 1.442695, %v1382_v23 }
 0x1c8   : > { %v1385_v39 = vsub.f32 %v2743_v50, %v1365_v37  ;;  %v1358_v41 = vmax.f32 %v1356_v20, %v1357_v33  ;;  %v1378_v43 = vrot.slane %v1377_v35, 1  ;;  %v1370_v42 = vmax.f32 %v1368_v30, %v1369_v36 }
 0x1c9   : > { %2214 = vpow2.f32 %v1392_v38 }
 0x1ca   : > { %v1398_v44 = vmul.f32 1.442695, %v1385_v39  ;;  %v1384_v45 = vsub.f32 %v1305_v7, %v1358_v41  ;;  %v1379_v47 = vmax.f32 %v1377_v35, %v1378_v43  ;;  %v1371_v49 = vrot.slane %v1370_v42, 1 }
 0x1cc   : > { %2216 = vpow2.f32 %v1398_v44  ;;  %v1396_v52 = vmul.f32 1.442695, %v1384_v45  ;;  %v1387_v54 = vsub.f32 %v1320_v32, %v1379_v47  ;;  %v1372_v48 = vmax.f32 %v1370_v42, %v1371_v49 }
 0x1ce   : > { %2218 = vpow2.f32 %v1396_v52  ;;  %v1402_v9 = vmul.f32 1.442695, %v1387_v54  ;;  %v1386_v59 = vsub.f32 %v1315_v40, %v1372_v48 }
 0x1d0   : > { %v2753_v55 = vpop.eup %2208  ;;  %2220 = vpow2.f32 %v1402_v9  ;;  %v1400_v61 = vmul.f32 1.442695, %v1386_v59 }
 0x1d1   : > { %v1411_v50 = vsel %vm1323_vm6, %v2753_v55, 0.0 }
 0x1d2   : > { %v2757_v62 = vpop.eup %2210  ;;  %v1412_v24 = vrot.slane %v1411_v50, 4  ;;  %2222 = vpow2.f32 %v1400_v61 }
 0x1d3   : > { %v1404_v7 = vsel %vm1323_vm6, %v2757_v62, 0.0 }
 0x1d4   : > { %v2761_v53 = vpop.eup %2212  ;;  %v1413_v32 = vadd.f32 %v1412_v24, %v1411_v50  ;;  %v1405_v4 = vrot.slane %v1404_v7, 4 }
 0x1d5   : > { %v1425_v40 = vsel %vm1323_vm6, %v2761_v53, 0.0 }
 0x1d6   : > { %v2765_v5 = vpop.eup %2214  ;;  %v1414_v25 = vrot.slane %v1413_v32, 2  ;;  %v1406_v10 = vadd.f32 %v1405_v4, %v1404_v7  ;;  %v1426_v34 = vrot.slane %v1425_v40, 4 }
 0x1d7   : > { %v1418_v57 = vsel %vm1323_vm6, %v2765_v5, 0.0 }
 0x1d8   : > { %v1407_v27 = vrot.slane %v1406_v10, 2  ;;  %v1427_v20 = vadd.f32 %v1426_v34, %v1425_v40  ;;  %v1419_v29 = vrot.slane %v1418_v57, 4  ;;  %v1415_v30 = vadd.f32 %v1414_v25, %v1413_v32 }
 0x1d9   : > { %v2769_v31 = vpop.eup %2216 }
 0x1da   : > { %v1428_v23 = vrot.slane %v1427_v20, 2  ;;  %v1420_v37 = vadd.f32 %v1419_v29, %v1418_v57  ;;  %v1439_v33 = vsel %vm1323_vm6, %v2769_v31, 0.0  ;;  %v1416_v35 = vrot.slane %v1415_v30, 1 }
 0x1db   : > { %v2773_v36 = vpop.eup %2218  ;;  %v1440_v38 = vrot.slane %v1439_v33, 4  ;;  %v1408_v39 = vadd.f32 %v1407_v27, %v1406_v10 }
 0x1dc   : > { %v1421_v41 = vrot.slane %v1420_v37, 2  ;;  %v1432_v43 = vsel %vm1323_vm6, %v2773_v36, 0.0  ;;  %v1417_v42 = vadd.f32 %v1416_v35, %v1415_v30  ;;  %v1429_v44 = vadd.f32 %v1428_v23, %v1427_v20 }
 0x1dd   : > { %v2777_v45 = vpop.eup %2220  ;;  %v1441_v47 = vadd.f32 %v1440_v38, %v1439_v33  ;;  %v1433_v49 = vrot.slane %v1432_v43, 4  ;;  %v1409_v52 = vrot.slane %v1408_v39, 1 }
 0x1de   : > { %v1453_v54 = vsel %vm1323_vm6, %v2777_v45, 0.0  ;;  %2224 = vrcp.f32 %v1417_v42  ;;  %v1430_v48 = vrot.slane %v1429_v44, 1  ;;  %v1422_v9 = vadd.f32 %v1421_v41, %v1420_v37 }
 0x1df   : > { %v2781_v59 = vpop.eup %2222  ;;  %v1442_v61 = vrot.slane %v1441_v47, 2  ;;  %v1434_v50 = vadd.f32 %v1433_v49, %v1432_v43  ;;  %v1454_v24 = vrot.slane %v1453_v54, 4  ;;  %v1410_v7 = vadd.f32 %v1409_v52, %v1408_v39 }
 0x1e0   : > { %v1446_v32 = vsel %vm1323_vm6, %v2781_v59, 0.0  ;;  %v1431_v4 = vadd.f32 %v1430_v48, %v1429_v44  ;;  %v1423_v40 = vrot.slane %v1422_v9, 1 }
 0x1e1   : > { %v1435_v25 = vrot.slane %v1434_v50, 2  ;;  %v1455_v10 = vadd.f32 %v1454_v24, %v1453_v54  ;;  %v1447_v34 = vrot.slane %v1446_v32, 4  ;;  %2226 = vrcp.f32 %v1410_v7 }
 0x1e2   : > { %2228 = vrcp.f32 %v1431_v4  ;;  %v1424_v57 = vadd.f32 %v1423_v40, %v1422_v9  ;;  %v1443_v27 = vadd.f32 %v1442_v61, %v1441_v47 }
 0x1e3   : > { %v1456_v20 = vrot.slane %v1455_v10, 2  ;;  %v1448_v29 = vadd.f32 %v1447_v34, %v1446_v32  ;;  %v1436_v30 = vadd.f32 %v1435_v25, %v1434_v50 }
 0x1e4   : > { %2230 = vrcp.f32 %v1424_v57  ;;  %v1444_v23 = vrot.slane %v1443_v27, 1 }
 0x1e5   : > { %v1449_v37 = vrot.slane %v1448_v29, 2  ;;  %v1437_v33 = vrot.slane %v1436_v30, 1  ;;  %v1457_v35 = vadd.f32 %v1456_v20, %v1455_v10 }
 0x1e6   : > { %v1445_v38 = vadd.f32 %v1444_v23, %v1443_v27 }
 0x1e7   : > { %v1438_v39 = vadd.f32 %v1437_v33, %v1436_v30  ;;  %v1450_v41 = vadd.f32 %v1449_v37, %v1448_v29  ;;  %v1458_v43 = vrot.slane %v1457_v35, 1 }
 0x1e8   : > { %2232 = vrcp.f32 %v1445_v38 }
 0x1e9   : > { %2234 = vrcp.f32 %v1438_v39  ;;  %v1451_v42 = vrot.slane %v1450_v41, 1  ;;  %v1459_v44 = vadd.f32 %v1458_v43, %v1457_v35 }
 0x1eb   : > { %v2225_v49 = vpop.eup %2224  ;;  %v1452_v52 = vadd.f32 %v1451_v42, %v1450_v41  ;;  %2236 = vrcp.f32 %v1459_v44 }
 0x1ec   : > { %v1469_v47 = vmul.f32 %v2225_v49, %v2753_v55 }
 0x1ed   : > { %2238 = vrcp.f32 %v1452_v52 }
 0x1ee   : > { %v2227_v54 = vpop.eup %2226  ;;  %v1477_v48 = vmul.f32 %v1469_v47, %v2546_v11  ;;  %1550 = vrot.lane.b32.xlu1 %v1469_v47, %s2321_s17 }
 0x1ef   : > { %v2229_v9 = vpop.eup %2228  ;;  %v1468_v61 = vmul.f32 %v2227_v54, %v2757_v62 }
 0x1f0   : > { %v1491_v50 = vsel %vm1064_vm3, %v1477_v48, 0.0  ;;  %v1471_v24 = vmul.f32 %v2229_v9, %v2761_v53 }
 0x1f1   : > { %v2231_v7 = vpop.eup %2230  ;;  %v1492_v32 = vrot.slane %v1491_v50, 4  ;;  %v1476_v4 = vmul.f32 %v1468_v61, %v2540_v8  ;;  %1548 = vrot.lane.b32.xlu0 %v1468_v61, %s2321_s17 }
 0x1f2   : > { %v1479_v55 = vmul.f32 %v1471_v24, %v2559_v13  ;;  %1554 = vrot.lane.b32.xlu1 %v1471_v24, %s2321_s17  ;;  %v1470_v11 = vmul.f32 %v2231_v7, %v2765_v5 }
 0x1f3   : > { %v1493_v40 = vadd.f32 %v1492_v32, %v1491_v50  ;;  %v1484_v25 = vsel %vm1064_vm3, %v1476_v4, 0.0 }
 0x1f4   : > { %v1485_v62 = vrot.slane %v1484_v25, 4  ;;  %v1505_v10 = vsel %vm1064_vm3, %v1479_v55, 0.0  ;;  %v1478_v53 = vmul.f32 %v1470_v11, %v2553_v12 }
 0x1f5   : > { %v2233_v34 = vpop.eup %2232  ;;  %v1494_v57 = vrot.slane %v1493_v40, 2  ;;  %v1506_v27 = vrot.slane %v1505_v10, 4 }
 0x1f6   : > { %v2235_v8 = vpop.eup %2234  ;;  %v1486_v20 = vadd.f32 %v1485_v62, %v1484_v25  ;;  %v1498_v29 = vsel %vm1064_vm3, %v1478_v53, 0.0  ;;  %1552 = vrot.lane.b32.xlu1 %v1470_v11, %s2321_s17  ;;  %v1473_v13 = vmul.f32 %v2233_v34, %v2769_v31 }
 0x1f7   : > { %v1495_v5 = vadd.f32 %v1494_v57, %v1493_v40  ;;  %v1507_v30 = vadd.f32 %v1506_v27, %v1505_v10  ;;  %v1499_v23 = vrot.slane %v1498_v29, 4  ;;  %v1472_v37 = vmul.f32 %v2235_v8, %v2773_v36  ;;  %v1641_v40 = vld [vmem:[%s2946_s10 + $0x8] sm:$0xff] }
 0x1f8   : > { %v2237_v33 = vpop.eup %2236  ;;  %v1487_v35 = vrot.slane %v1486_v20, 2  ;;  %v1481_v12 = vmul.f32 %v1473_v13, %v2567_v16  ;;  %v1643_v16 = vld [vmem:[%s2946_s10 + $0x18] sm:$0xff] }
 0x1f9   : > { %v1508_v38 = vrot.slane %v1507_v30, 2  ;;  %v1500_v39 = vadd.f32 %v1499_v23, %v1498_v29  ;;  %1556 = vrot.lane.b32.xlu0 %v1472_v37, %s2321_s17  ;;  %v1480_v41 = vmul.f32 %v1472_v37, %v2564_v14  ;;  %v1475_v31 = vmul.f32 %v2237_v33, %v2777_v45  ;;  %2111 = vmatpush3.msra.mxu0 %v1643_v16  ;;  %v1642_v45 = vld [vmem:[%s2946_s10 + $0x10] sm:$0xff] }
 0x1fa   : > { %v2239_v43 = vpop.eup %2238  ;;  %v1488_v42 = vadd.f32 %v1487_v35, %v1486_v20  ;;  %v1519_v44 = vsel %vm1064_vm3, %v1481_v12, 0.0  ;;  %1558 = vrot.lane.b32.xlu1 %v1473_v13, %s2321_s17  ;;  %v1496_v49 = vrot.slane %v1495_v5, 1  ;;  %2112 = vmatprep.subr.mxu0 %v2318_v2 }
 0x1fb   : > { %v1509_v36 = vadd.f32 %v1508_v38, %v1507_v30  ;;  %v1501_v52 = vrot.slane %v1500_v39, 2  ;;  %v1512_v47 = vsel %vm1064_vm3, %v1480_v41, 0.0  ;;  %v1520_v14 = vrot.slane %v1519_v44, 4  ;;  %2113 = vmatpush3.msra.mxu0 %v1642_v45 }
 0x1fc   : > { %v1489_v54 = vrot.slane %v1488_v42, 1  ;;  %v1513_v48 = vrot.slane %v1512_v47, 4  ;;  %v1474_v9 = vmul.f32 %v2239_v43, %v2781_v59  ;;  %v1483_v24 = vmul.f32 %v1475_v31, %v2577_v18  ;;  %2114 = vmatprep.subr.mxu0 %v2318_v2 }
 0x1fd   : > { %v1510_v61 = vrot.slane %v1509_v36, 1  ;;  %v1502_v50 = vadd.f32 %v1501_v52, %v1500_v39  ;;  %v1521_v4 = vadd.f32 %v1520_v14, %v1519_v44  ;;  %v1497_v59 = vadd.f32 %v1496_v49, %v1495_v5  ;;  %2115 = vmatpush3.msra.mxu0 %v1641_v40 }
 0x1fe   : > { %v1490_v7 = vadd.f32 %v1489_v54, %v1488_v42  ;;  %v1514_v32 = vadd.f32 %v1513_v48, %v1512_v47  ;;  %1560 = vrot.lane.b32.xlu0 %v1474_v9, %s2321_s17  ;;  %v1482_v55 = vmul.f32 %v1474_v9, %v2574_v17  ;;  %1562 = vrot.lane.b32.xlu1 %v1475_v31, %s2321_s17  ;;  %v1533_v18 = vsel %vm1064_vm3, %v1483_v24, 0.0  ;;  %v1640_v17 = vld [vmem:[%s2946_s10] sm:$0xff]  ;;  %s478_s17 = scalar_lea.vmem [#allocation2], %s1962_s1 }
 0x1ff   : > { %v1503_v11 = vrot.slane %v1502_v50, 1  ;;  %v1522_v62 = vrot.slane %v1521_v4, 2  ;;  %v1534_v53 = vrot.slane %v1533_v18, 4  ;;  %v1511_v8 = vadd.f32 %v1510_v61, %v1509_v36  ;;  %2116 = vmatprep.subr.mxu0 %v2318_v2  ;;  %s1850_s30 = sshll.u32 %s478_s17, 4  ;;  %s1851_s30 = int_to_ptr.vmem [resolvable:$true] %s1850_s30 }
 0x200   : > { %v1515_v25 = vrot.slane %v1514_v32, 2  ;;  %v1526_v10 = vsel %vm1064_vm3, %v1482_v55, 0.0  ;;  %v1746_v27 = vsel %vm1652_vm7, %v1497_v59, %v1490_v7  ;;  %2117 = vmatpush3.msra.mxu0 %v1640_v17  ;;  %s2240_s2 = scalar_lea.vmem %s1851_s30, 128  ;;  %p2247_p1 = scmp.lt.s32.totalorder %s1851_s30, %s2245_s28 }
 0x201   : > { %v1504_v34 = vadd.f32 %v1503_v11, %v1502_v50  ;;  %v1527_v57 = vrot.slane %v1526_v10, 4  ;;  %v1523_v29 = vadd.f32 %v1522_v62, %v1521_v4  ;;  %v1535_v13 = vadd.f32 %v1534_v53, %v1533_v18  ;;  %2121 = vmatprep.subr.mxu0 %v2318_v2  ;;  %p2241_p12 = scmp.ne.s32.totalorder %s1851_s30, %s2240_s2  ;;  %p2248_p2 = scmp.lt.s32.totalorder %s2246_s24, %s2240_s2 }
 0x202   : > { %v1516_v20 = vadd.f32 %v1515_v25, %v1514_v32 }
 0x203   : > { %v1528_v5 = vadd.f32 %v1527_v57, %v1526_v10  ;;  %v1747_v30 = vsel %vm1654_vm8, %v1504_v34, %v1746_v27  ;;  %v1524_v37 = vrot.slane %v1523_v29, 1  ;;  %v1536_v33 = vrot.slane %v1535_v13, 2  ;;  %p2242_p13 = pnand %p2241_p12, %p2428_p4  ;;  %p2249_p3 = por %p2248_p2, %p2247_p1 }
 0x204   : > { %v1517_v23 = vrot.slane %v1516_v20, 1  ;;  %v1748_v35 = vsel %vm1656_vm9, %v1511_v8, %v1747_v30 }
 0x205   : > { %v1529_v12 = vrot.slane %v1528_v5, 2  ;;  %v1537_v39 = vadd.f32 %v1536_v33, %v1535_v13  ;;  %v1525_v41 = vadd.f32 %v1524_v37, %v1523_v29  ;;  %p2243_p0 = pneg %p2242_p13 }
 0x206   : > { %v1518_v38 = vadd.f32 %v1517_v23, %v1516_v20 }
 0x207   : > { %v1530_v43 = vadd.f32 %v1529_v12, %v1528_v5  ;;  %v1538_v42 = vrot.slane %v1537_v39, 1  ;;  %p2250_p5 = pnand %p2249_p3, %p2243_p0 }
 0x208   : > { %v1749_v44 = vsel %vm1658_vm10, %v1518_v38, %v1748_v35 }
 0x209   : > { %v1531_v31 = vrot.slane %v1530_v43, 1  ;;  %v1750_v49 = vsel %vm1660_vm11, %v1525_v41, %v1749_v44  ;;  %v1539_v52 = vadd.f32 %v1538_v42, %v1537_v39 }
 0x20b   : > { %v1532_v36 = vadd.f32 %v1531_v31, %v1530_v43 }
 0x20d   : > { %v1751_v47 = vsel %vm1662_vm12, %v1532_v36, %v1750_v49 }
 0x20e   : > { %v2840_v16 = vsel %vm1664_vm13, %v1539_v52, %v1751_v47 }
 0x260   : > { %v1551_v54 = vpop.permute.xlu1 %1550 }
 0x261   : > { %v1573_v48 = vmul.f32 %v1551_v54, %v1049_v63 }
 0x263   : > { %v1587_v14 = vsel %vm1064_vm3, %v1573_v48, 0.0  ;;  %v1549_v9 = vpop.permute.xlu0 %1548 }
 0x264   : > { %v1588_v61 = vrot.slane %v1587_v14, 4  ;;  %v1572_v50 = vmul.f32 %v1549_v9, %v1048_v58  ;;  %v1555_v24 = vpop.permute.xlu1 %1554 }
 0x265   : > { %v1575_v45 = vmul.f32 %v1555_v24, %v1051_v15 }
 0x266   : > { %v1589_v7 = vadd.f32 %v1588_v61, %v1587_v14  ;;  %v1580_v32 = vsel %vm1064_vm3, %v1572_v50, 0.0 }
 0x267   : > { %v1581_v4 = vrot.slane %v1580_v32, 4  ;;  %v1601_v55 = vsel %vm1064_vm3, %v1575_v45, 0.0 }
 0x268   : > { %v1602_v59 = vrot.slane %v1601_v55, 4  ;;  %v1553_v56 = vpop.permute.xlu1 %1552  ;;  %v1590_v63 = vrot.slane %v1589_v7, 2 }
 0x269   : > { %v1582_v11 = vadd.f32 %v1581_v4, %v1580_v32  ;;  %v1574_v18 = vmul.f32 %v1553_v56, %v1050_v1 }
 0x26a   : > { %v1603_v40 = vadd.f32 %v1602_v59, %v1601_v55  ;;  %v1591_v53 = vadd.f32 %v1590_v63, %v1589_v7 }
 0x26b   : > { %v1583_v46 = vrot.slane %v1582_v11, 2  ;;  %v1594_v58 = vsel %vm1064_vm3, %v1574_v18, 0.0  ;;  %v1557_v25 = vpop.permute.xlu0 %1556  ;;  %v1639_v18 = vld [vmem:[%s2945_s9 + $0x18] sm:$0xff] }
 0x26c   : > { %v1604_v0 = vrot.slane %v1603_v40, 2  ;;  %v1595_v15 = vrot.slane %v1594_v58, 4  ;;  %v1576_v62 = vmul.f32 %v1557_v25, %v1052_v21  ;;  %v1559_v10 = vpop.permute.xlu1 %1558  ;;  %v1592_v30 = vrot.slane %v1591_v53, 1  ;;  %v1636_v25 = vld [vmem:[%s2945_s9] sm:$0xff] }
 0x26d   : > { %v1584_v17 = vadd.f32 %v1583_v46, %v1582_v11  ;;  %v1577_v34 = vmul.f32 %v1559_v10, %v1053_v26  ;;  %v1638_v46 = vld [vmem:[%s2945_s9 + $0x10] sm:$0xff]  ;;  %v1999_v10 = vld [vmem:[%s2947_s11] ss:$0 sm:$0xff] }
 0x26e   : > { %v1596_v57 = vadd.f32 %v1595_v15, %v1594_v58  ;;  %v1608_v60 = vsel %vm1064_vm3, %v1576_v62, 0.0  ;;  %v1605_v27 = vadd.f32 %v1604_v0, %v1603_v40  ;;  %v1593_v44 = vadd.f32 %v1592_v30, %v1591_v53  ;;  %v1637_v58 = vld [vmem:[%s2945_s9 + $0x8] sm:$0xff] }
 0x26f   : > { %v1585_v1 = vrot.slane %v1584_v17, 1  ;;  %v1609_v8 = vrot.slane %v1608_v60, 4  ;;  %v1615_v20 = vsel %vm1064_vm3, %v1577_v34, 0.0 }
 0x270   : > { %v1597_v29 = vrot.slane %v1596_v57, 2  ;;  %v1616_v13 = vrot.slane %v1615_v20, 4  ;;  %v1561_v5 = vpop.permute.xlu0 %1560  ;;  %v1563_v23 = vpop.permute.xlu1 %1562  ;;  %v1606_v35 = vrot.slane %v1605_v27, 1 }
 0x271   : > { %v1610_v6 = vadd.f32 %v1609_v8, %v1608_v60  ;;  %v1578_v21 = vmul.f32 %v1561_v5, %v1054_v28  ;;  %v1579_v26 = vmul.f32 %v1563_v23, %v1055_v51  ;;  %v1586_v33 = vadd.f32 %v1585_v1, %v1584_v17 }
 0x272   : > { %v1598_v37 = vadd.f32 %v1597_v29, %v1596_v57  ;;  %v1617_v19 = vadd.f32 %v1616_v13, %v1615_v20  ;;  %v1607_v3 = vadd.f32 %v1606_v35, %v1605_v27 }
 0x273   : > { %v1611_v12 = vrot.slane %v1610_v6, 2  ;;  %v1622_v38 = vsel %vm1064_vm3, %v1578_v21, 0.0  ;;  %v1629_v42 = vsel %vm1064_vm3, %v1579_v26, 0.0  ;;  %v1653_v52 = vsel %vm1652_vm7, %v1593_v44, %v1586_v33 }
 0x274   : > { %v1599_v39 = vrot.slane %v1598_v37, 1  ;;  %v1618_v41 = vrot.slane %v1617_v19, 2  ;;  %v1623_v43 = vrot.slane %v1622_v38, 4  ;;  %v1630_v22 = vrot.slane %v1629_v42, 4 }
 0x275   : > { %v1612_v31 = vadd.f32 %v1611_v12, %v1610_v6 }
 0x276   : > { %v1600_v28 = vadd.f32 %v1599_v39, %v1598_v37  ;;  %v1619_v49 = vadd.f32 %v1618_v41, %v1617_v19  ;;  %v1624_v36 = vadd.f32 %v1623_v43, %v1622_v38  ;;  %v1631_v47 = vadd.f32 %v1630_v22, %v1629_v42 }
 0x277   : > { %v1613_v51 = vrot.slane %v1612_v31, 1 }
 0x278   : > { %v1655_v54 = vsel %vm1654_vm8, %v1600_v28, %v1653_v52  ;;  %v1620_v48 = vrot.slane %v1619_v49, 1  ;;  %v1625_v14 = vrot.slane %v1624_v36, 2  ;;  %v1632_v50 = vrot.slane %v1631_v47, 2 }
 0x279   : > { %v1614_v9 = vadd.f32 %v1613_v51, %v1612_v31  ;;  %v1657_v61 = vsel %vm1656_vm9, %v1607_v3, %v1655_v54 }
 0x27a   : > { %v1621_v24 = vadd.f32 %v1620_v48, %v1619_v49  ;;  %v1626_v45 = vadd.f32 %v1625_v14, %v1624_v36  ;;  %v1633_v32 = vadd.f32 %v1632_v50, %v1631_v47 }
 0x27b   : > { %v1659_v7 = vsel %vm1658_vm10, %v1614_v9, %v1657_v61 }
 0x27c   : > { %v1627_v4 = vrot.slane %v1626_v45, 1  ;;  %v1661_v55 = vsel %vm1660_vm11, %v1621_v24, %v1659_v7  ;;  %v1634_v59 = vrot.slane %v1633_v32, 1 }
 0x27e   : > { %v1628_v56 = vadd.f32 %v1627_v4, %v1626_v45  ;;  %v1635_v63 = vadd.f32 %v1634_v59, %v1633_v32 }
 0x280   : > { %v1663_v11 = vsel %vm1662_vm12, %v1628_v56, %v1661_v55 }
 0x281   : > { %v1665_v40 = vsel %vm1664_vm13, %v1635_v63, %v1663_v11 }
 0x282   : > { %2119 = vmatmul.mubr.msk.f32.vlgmr.msra.gmra.mxu0 %vm1064_vm3, %v1665_v40 }
 0x283   : > { %2122 = vmatpush3.msra.mxu0 %v1639_v18  ;;  %2129 = vmatprep.mubr.msk.f32.mxu0 %vm2319_vm1, %v2318_v2 }
 0x284   : > { %2123 = vmatprep.subr.mxu0 %v2318_v2 }
 0x285   : > { %2124 = vmatpush3.msra.mxu0 %v1638_v46 }
 0x286   : > { %2125 = vmatprep.subr.mxu0 %v2318_v2 }
 0x287   : > { %2126 = vmatpush3.msra.mxu0 %v1637_v58 }
 0x288   : > { %2127 = vmatprep.subr.mxu0 %v2318_v2 }
 0x289   : > { %2128 = vmatpush3.msra.mxu0 %v1636_v25 }
 0x28a   : > { %2130 = vmatmul.mubr.msk.f32.vlgmr.msra.gmra.mxu0 %vm1064_vm3, %v2840_v16 }
 0x342   : > { %v1734_v0 = vpop.f32.mrf.mxu0 }
 0x344   : > { %v2120_v15 = vpop.f32.mrf.mxu0 }
 0x34a   : > { %v1821_v62 = vpop.f32.mrf.mxu0 }
 0x34b   : > { %v1822_v53 = vadd.f32 %v1821_v62, %v1734_v0 }
 0x34c   : > { %v2131_v17 = vpop.f32.mrf.mxu0 }
 0x34d   : > { %v1832_v2 = vadd.f32 %v1999_v10, %v1822_v53 }
 0x34f   : > { %v1833_v34 = vmax.f32 %v1832_v2, 0.0 }
 0x351   : > { %1834 = vst.msk [vmem:[%s478_s17] sm:$0xff] %vm1064_vm3, %v1833_v34 }
 0x352   : > { %2253 = shalt.err (!%p2250_p5)
}
 0x353   : > { %s2254_s1 = scalar_lea.hbm %s1848_s19, 128  ;;  %s2258_s17 = scalar_lea.hbm %s2948_s12, 256 }
 0x354   : > { %p2255_p6 = scmp.ne.s32.totalorder %s1848_s19, %s2254_s1  ;;  %p2259_p10 = scmp.lt.s32.totalorder %s1848_s19, %s2948_s12 }
 0x355   : > { %p2260_p11 = scmp.lt.s32.totalorder %s2258_s17, %s2254_s1 }
 0x356   : > { %p2256_p7 = pnand %p2255_p6, %p2428_p4 }
 0x357   : > { %p2261_p12 = por %p2260_p11, %p2259_p10 }
 0x358   : > { %p2257_p9 = pneg %p2256_p7 }
 0x35a   : > { %p2262_p13 = pnand %p2261_p12, %p2257_p9 }
 0x35c   : > { %2265 = shalt.err (!%p2262_p13)
}
 0x35d   : > { %2132 = dma.vmem_to_hbm [thread:$0]  (%p2428_p4), %s1851_s30, 128, %s1848_s19, %s1836_s0  }
 0x35e PF: > { %p2138_p0 = scmp.ge.s32.totalorder %s2316_s26, 2  ;;  %s1862_s2 = sand.u32 1, %s2296_s21  }
 0x35f   : > { %s1863_s3 = scalar_lea.sflag [#allocation3], %s1862_s2 }
 0x360   : > { %p2135_p1 = pnand %p2138_p0, %p2435_p8 }
 0x362   : > { %p2136_p2 = pneg %p2135_p1 }
 0x364   : > { %2291 = dma.done.wait (%p2136_p2), %s1863_s3, 128  }
 0x365   : > { %2293 = vsyncadd (%p2136_p2), %s1863_s3, 4294967168  ;;  %s25_s26 = sadd.s32 1, %s2316_s26   ;;  %s2961_s21 = smov %s2300_s22 }
 0x366   : > { %p22_p3 = scmp.ge.s32.totalorder %s25_s26, 4   ;;  %s2962_s22 = smov %s2304_s23 }
 0x367   : > { %s2963_s23 = smov %s2441_s16  ;;  %s2964_s24 = smov %s2312_s25 }
 0x368   : > { %s2965_s25 = smov %s2967_s29  ;;  %24 = sbr.rel (!%p22_p3) target bundleno = 9 (0x9), region = 109 }
 0x36d   :  { %1868 = vsyncpa [#allocation3], 1 }
 0x36e   :  { %1870 = vsyncpa [#allocation3 + $0x1], 1 }

</bundles_post_ra>
